<compile_context>
chip_gen: v5e
topology: v5e:2x2
jax: 0.10.0
libtpu: 0.0.40
codegen_flags: <defaults>
</compile_context>

<pallas_src>
import functools

import numpy as np
import jax
import jax.numpy as jnp
from jax.experimental import pallas as pl
from jax.experimental.pallas import tpu as pltpu


# ----------------------------------------------------------------------------
# Host-side validity check (replaces the in-graph sentinel check).
# ----------------------------------------------------------------------------
def check_action_sequence_complete(a_host) -> None:
    """Train-mode check `np.any(a[-1, :] != -1)` done on host numpy.

    Running it on host *before* the device path keeps add_previous_actions
    jittable and avoids a device->host sync per call.
    """
    a_np = np.asarray(a_host)
    if np.any(a_np[-1, :] != -1):
        raise RuntimeError("ActionSequence is incomplete")


# ----------------------------------------------------------------------------
# Kernels: single sliced ref->ref copy (start/length are compile-time ints).
# ----------------------------------------------------------------------------
def _prev_actions_kernel(a_ref, out_ref, *, start, length):
    # out[r, c] = a[start + r, 1 + c]; pure vld/vst, no concat, no XLU work.
    out_ref[...] = a_ref[start:start + length, 1:]


def _prev_actions_batched_kernel(a_ref, out_ref, *, start, length):
    # a_ref: (1, L, C) block, out_ref: (1, length, C-1) block.
    out_ref[...] = a_ref[:, start:start + length, 1:]


def _row_window(L, train, n_dependent):
    """Static (start, length) of the row slice, matching the torch module."""
    if train:
        return 0, L - 2                       # a[:-2, 1:]
    length = L - 1                            # a[:-1, 1:]
    if n_dependent is not None:
        length = min(n_dependent, L - 1)      # [-n_dependent:, :]
    start = (L - 1) - length
    return start, length


# ----------------------------------------------------------------------------
# Single-sequence wrapper:  a [L, C] int32 -> [L_out, C-1] int32.
# ----------------------------------------------------------------------------
def _add_previous_actions_impl(a, *, train, n_dependent=None):
    L, C = a.shape
    start, length = _row_window(L, train, n_dependent)
    kernel = functools.partial(_prev_actions_kernel, start=start, length=length)
    return pl.pallas_call(
        kernel,
        out_shape=jax.ShapeDtypeStruct((length, C - 1), a.dtype),
        # Whole-array blocks (block_shape == array shape => exempt from the
        # (8,128) divisibility rule); arrays are tiny so one VMEM tile each.
        in_specs=[pl.BlockSpec(a.shape, lambda: (0, 0))],
        out_specs=pl.BlockSpec((length, C - 1), lambda: (0, 0)),
    )(a)


add_previous_actions = jax.jit(
    _add_previous_actions_impl, static_argnames=("train", "n_dependent"))


# ----------------------------------------------------------------------------
# Batched wrapper:  a [B, L, C] int32 -> [B, L_out, C-1] int32.
# One grid step per sequence; batch axis marked "parallel" so v7x's two
# TensorCores split it (harmless on single-TC v5e/v6e).
# ----------------------------------------------------------------------------
def _add_previous_actions_batched_impl(a, *, train, n_dependent=None):
    B, L, C = a.shape
    start, length = _row_window(L, train, n_dependent)
    kernel = functools.partial(
        _prev_actions_batched_kernel, start=start, length=length)
    return pl.pallas_call(
        kernel,
        out_shape=jax.ShapeDtypeStruct((B, length, C - 1), a.dtype),
        grid=(B,),
        in_specs=[pl.BlockSpec((1, L, C), lambda b: (b, 0, 0))],
        out_specs=pl.BlockSpec((1, length, C - 1), lambda b: (b, 0, 0)),
        compiler_params=pltpu.CompilerParams(
            dimension_semantics=("parallel",)),
    )(a)


add_previous_actions_batched = jax.jit(
    _add_previous_actions_batched_impl, static_argnames=("train", "n_dependent"))


# ----------------------------------------------------------------------------
# Pure-JAX reference (mirrors the torch module).
# ----------------------------------------------------------------------------
def _reference(a, *, train, n_dependent=None):
    a = jnp.asarray(a)
    if train:
        return a[:-2, 1:]
    out = a[:-1, 1:]
    if n_dependent is not None:
        out = out[-n_dependent:, :]
    return out


if __name__ == "__main__":
    key = jax.random.PRNGKey(0)
    k1, k2 = jax.random.split(key)

    # Small synthetic "encoded action sequence": L=8 steps, C=4 columns.
    L, C, B = 8, 4, 2
    a_np = np.array(jax.random.randint(k1, (L, C), 0, 50, dtype=jnp.int32))
    a_np[-1, :] = -1          # training-mode convention: final row is the -1 sentinel
    a = jnp.asarray(a_np)

    # ---- train path: host-side completeness check, then kernel ----
    check_action_sequence_complete(a_np)
    out_train = jax.block_until_ready(add_previous_actions(a, train=True))
    assert out_train.shape == (L - 2, C - 1)
    assert bool(jnp.all(out_train == _reference(a, train=True)))

    # ---- eval path, full ----
    out_eval = jax.block_until_ready(add_previous_actions(a, train=False))
    assert out_eval.shape == (L - 1, C - 1)
    assert bool(jnp.all(out_eval == _reference(a, train=False)))

    # ---- eval path with n_dependent ----
    out_dep = jax.block_until_ready(
        add_previous_actions(a, train=False, n_dependent=4))
    assert out_dep.shape == (4, C - 1)
    assert bool(jnp.all(out_dep == _reference(a, train=False, n_dependent=4)))

    # ---- batched variant (B sequences per pallas_call) ----
    ab = jax.random.randint(k2, (B, L, C), 0, 50, dtype=jnp.int32)
    ab = ab.at[:, -1, :].set(-1)
    out_b = jax.block_until_ready(add_previous_actions_batched(ab, train=True))
    assert out_b.shape == (B, L - 2, C - 1)
    for b in range(B):
        assert bool(jnp.all(out_b[b] == _reference(ab[b], train=True)))

    out_be = jax.block_until_ready(
        add_previous_actions_batched(ab, train=False, n_dependent=4))
    assert out_be.shape == (B, 4, C - 1)
    for b in range(B):
        assert bool(jnp.all(out_be[b] == _reference(ab[b], train=False,
                                                    n_dependent=4)))

    print("KERNEL_OK")
</pallas_src>

<mosaic_0001>
module attributes {stable_mosaic.version = 11 : i64} {
  func.func @_prev_actions_kernel(%arg0: memref<8x4xi32, #tpu.memory_space<vmem>>, %arg1: memref<6x3xi32, #tpu.memory_space<vmem>>) attributes {dimension_semantics = [], scalar_prefetch = 0 : i64, scratch_operands = 0 : i64, tpu.core_type = #tpu.core_type<tc>} {
    %c0 = arith.constant 0 : index
    %c1 = arith.constant 1 : index
    %0 = vector.load %arg0[%c0, %c1] : memref<8x4xi32, #tpu.memory_space<vmem>>, vector<6x3xi32>
    %c0_0 = arith.constant 0 : index
    %c0_1 = arith.constant 0 : index
    %1 = vector.load %arg1[%c0_0, %c0_1] : memref<6x3xi32, #tpu.memory_space<vmem>>, vector<6x3xi32>
    tpu.vector_store %arg1[%c0_0, %c0_1], %0 {strides = array<i32>} : memref<6x3xi32, #tpu.memory_space<vmem>>, vector<6x3xi32>,
    return
  }
}

</mosaic_0001>

<bundles_post_ra>
// kernel: _add_previous_actions_impl.1
= control target key start
LH: loop header
LB: loop body
LE: loop exit
PB: predicated region body
PF: predicated region fallthrough
CT: control target
= control target key end

     0   :  { %s18_s8 = smov 127   ;;  %vm11_vm0 = vcmask 21504   ;;  %s35_s0 = inlined_call_operand.vmem [shape: s32[8,4], index: 0, kind: input, shape index: {}]   ;;  %s36_s1 = inlined_call_operand.vmem [shape: s32[6,3], index: 1, kind: output, shape index: {}]  }
   0x1   :  { %v8_v0 = vld [vmem:[%s35_s0] sm:$0x3f] }
   0x2   :  { %9 = vrot.lane.b32.xlu0 %v8_v0, %s18_s8 }
  0x74   :  { %v10_v1 = vpop.permute.xlu0 %9 }
  0x75   :  { %12 = vst.msk [vmem:[%s36_s1] sm:$0x3f] %vm11_vm0, %v10_v1 }

</bundles_post_ra>
